<compile_context>
chip_gen: v6e
topology: v6e:2x2x1
jax: 0.10.0
libtpu: 0.0.40
codegen_flags: <defaults>
</compile_context>

<pallas_src>
import jax
import jax.numpy as jnp
from jax.experimental import pallas as pl
from jax.experimental.pallas import tpu as pltpu


def feature_map_kernel(x_ref, w_ref, b_ref, o_ref):
    # x_ref: [N, Cin, T_HW]   w_ref: [Cout, Cin]   b_ref: [Cout, 1]
    # o_ref: [N, Cout, T_HW]
    w = w_ref[...]
    b = b_ref[...]
    # N is tiny and static -> unrolled loop; each iteration is one MXU matmul
    # [Cout, Cin] @ [Cin, T_HW] with a lane-dense [Cout, T_HW] store.
    for n in range(x_ref.shape[0]):
        y = jnp.dot(w, x_ref[n], preferred_element_type=jnp.float32)
        o_ref[n] = (y + b).astype(o_ref.dtype)


def feature_map_block(x_nchw, w, b, *, t_hw_max=8192):
    """1x1 conv (FeatureMapBlock). x_nchw: [N, Cin, H, W], w: [Cout, Cin], b: [Cout].
    Returns [N, Cout, H, W] with the same semantics/dtype as nn.Conv2d(Cin, Cout, 1)."""
    N, Cin, H, W = x_nchw.shape
    Cout = w.shape[0]
    HW = H * W

    # Free, contiguous reshapes — no transposes, no extra HBM traffic.
    x_flat = x_nchw.reshape(N, Cin, HW)
    b2 = b.reshape(Cout, 1)

    # Spatial tiling only kicks in for large feature maps; the toy 16x16 case
    # runs as a single grid step.  T_HW is a multiple of 128 (lane-dense) and
    # capped so 2 buffers x N x (Cin + Cout) x T_HW x 4B stays well inside the
    # scoped VMEM budget on v7x (64 MiB physical / 32 MiB default scoped).
    if HW > t_hw_max and HW % t_hw_max == 0:
        t_hw = t_hw_max
    else:
        t_hw = HW
    grid = (HW // t_hw,)

    out_flat = pl.pallas_call(
        feature_map_kernel,
        out_shape=jax.ShapeDtypeStruct((N, Cout, HW), x_nchw.dtype),
        grid_spec=pltpu.PrefetchScalarGridSpec(
            num_scalar_prefetch=0,
            grid=grid,  # (1,) at toy shapes; HW tiles for large feature maps
            in_specs=[
                pl.BlockSpec((N, Cin, t_hw), lambda h: (0, 0, h)),   # activations
                pl.BlockSpec((Cout, Cin), lambda h: (0, 0)),          # weights resident
                pl.BlockSpec((Cout, 1), lambda h: (0, 0)),            # bias resident
            ],
            out_specs=pl.BlockSpec((N, Cout, t_hw), lambda h: (0, 0, h)),
        ),
        compiler_params=pltpu.CompilerParams(
            # Only relevant once HW is large enough for multiple tiles; each
            # tile writes a disjoint output block so the axis is parallel.
            dimension_semantics=("parallel",)),
    )(x_flat, w, b2)

    return out_flat.reshape(N, Cout, H, W)


def reference_forward(x_nchw, w, b):
    """Pure-JAX reference with exact nn.Conv2d(k=1) semantics (NCHW / OIHW)."""
    w4 = w.reshape(w.shape[0], w.shape[1], 1, 1)
    dn = ('NCHW', 'OIHW', 'NCHW')
    y = jax.lax.conv_general_dilated(x_nchw, w4, (1, 1), 'VALID',
                                     dimension_numbers=dn)
    return y + b[None, :, None, None]


if __name__ == "__main__":
    # Small shapes consistent with the module: N=2, input_channels=4,
    # 16x16 spatial, output_channels=8 (channel expansion).
    N, Cin, H, W = 2, 4, 16, 16
    Cout = 8

    key = jax.random.PRNGKey(0)
    kx, kw, kb = jax.random.split(key, 3)

    x = jax.random.normal(kx, (N, Cin, H, W), dtype=jnp.float32)

    # PyTorch-style uniform init bounds: 1/sqrt(fan_in), fan_in = Cin * 1 * 1.
    bound = 1.0 / (Cin * 1 * 1) ** 0.5
    w = jax.random.uniform(kw, (Cout, Cin), jnp.float32, -bound, bound)
    b = jax.random.uniform(kb, (Cout,), jnp.float32, -bound, bound)

    out = feature_map_block(x, w, b)
    out = jax.block_until_ready(out)

    ref = jax.block_until_ready(reference_forward(x, w, b))
    assert out.shape == (N, Cout, H, W), out.shape
    assert out.dtype == x.dtype, out.dtype
    assert jnp.allclose(out, ref, atol=1e-5, rtol=1e-5), "mismatch vs JAX reference"

    print("KERNEL_OK")
</pallas_src>

<mosaic_0001>
module attributes {stable_mosaic.version = 11 : i64} {
  func.func @feature_map_kernel(%arg0: i32, %arg1: memref<2x4x256xf32, #tpu.memory_space<vmem>>, %arg2: memref<8x4xf32, #tpu.memory_space<vmem>>, %arg3: memref<8x1xf32, #tpu.memory_space<vmem>>, %arg4: memref<2x8x256xf32, #tpu.memory_space<vmem>>) attributes {dimension_semantics = [#tpu.dimension_semantics<parallel>], iteration_bounds = array<i64: 1>, scalar_prefetch = 0 : i64, scratch_operands = 0 : i64, tpu.core_type = #tpu.core_type<tc>, window_params = [{transform_indices = @transform_0, window_bounds = array<i64: 2, 4, 256>}, {pipeline_mode = #tpu.pipeline_mode<synchronous>, transform_indices = @transform_1, window_bounds = array<i64: 8, 4>}, {pipeline_mode = #tpu.pipeline_mode<synchronous>, transform_indices = @transform_2, window_bounds = array<i64: 8, 1>}, {transform_indices = @transform_3, window_bounds = array<i64: 2, 8, 256>}]} {
    %c0 = arith.constant 0 : index
    %c0_0 = arith.constant 0 : index
    %0 = vector.load %arg2[%c0, %c0_0] : memref<8x4xf32, #tpu.memory_space<vmem>>, vector<8x4xf32>
    %c0_1 = arith.constant 0 : index
    %c0_2 = arith.constant 0 : index
    %1 = vector.load %arg3[%c0_1, %c0_2] : memref<8x1xf32, #tpu.memory_space<vmem>>, vector<8x1xf32>
    %c0_3 = arith.constant 0 : index
    %c0_4 = arith.constant 0 : index
    %c0_5 = arith.constant 0 : index
    %2 = vector.load %arg1[%c0_3, %c0_4, %c0_5] : memref<2x4x256xf32, #tpu.memory_space<vmem>>, vector<1x4x256xf32>
    %3 = vector.shape_cast %2 : vector<1x4x256xf32> to vector<4x256xf32>
    %cst = arith.constant dense<0.000000e+00> : vector<8x256xf32>
    %4 = tpu.matmul %0, %3, %cst {dimension_numbers = #tpu.dot_dimension_numbers<[1], [0], [0], [1], [0, 0, 1, 1], [], []>} : vector<8x4xf32>, vector<4x256xf32>, vector<8x256xf32> -> vector<8x256xf32>
    %5 = vector.broadcast %1 : vector<8x1xf32> to vector<8x256xf32>
    %6 = arith.addf %4, %5 : vector<8x256xf32>
    %c0_6 = arith.constant 0 : index
    %c0_7 = arith.constant 0 : index
    %c0_8 = arith.constant 0 : index
    %7 = vector.load %arg4[%c0_6, %c0_7, %c0_8] : memref<2x8x256xf32, #tpu.memory_space<vmem>>, vector<1x8x256xf32>
    %8 = vector.shape_cast %7 : vector<1x8x256xf32> to vector<8x256xf32>
    %9 = vector.shape_cast %6 : vector<8x256xf32> to vector<1x8x256xf32>
    tpu.vector_store %arg4[%c0_6, %c0_7, %c0_8], %9 {strides = array<i32>} : memref<2x8x256xf32, #tpu.memory_space<vmem>>, vector<1x8x256xf32>,
    %c1 = arith.constant 1 : index
    %c0_9 = arith.constant 0 : index
    %c0_10 = arith.constant 0 : index
    %10 = vector.load %arg1[%c1, %c0_9, %c0_10] : memref<2x4x256xf32, #tpu.memory_space<vmem>>, vector<1x4x256xf32>
    %11 = vector.shape_cast %10 : vector<1x4x256xf32> to vector<4x256xf32>
    %cst_11 = arith.constant dense<0.000000e+00> : vector<8x256xf32>
    %12 = tpu.matmul %0, %11, %cst_11 {dimension_numbers = #tpu.dot_dimension_numbers<[1], [0], [0], [1], [0, 0, 1, 1], [], []>} : vector<8x4xf32>, vector<4x256xf32>, vector<8x256xf32> -> vector<8x256xf32>
    %13 = vector.broadcast %1 : vector<8x1xf32> to vector<8x256xf32>
    %14 = arith.addf %12, %13 : vector<8x256xf32>
    %c1_12 = arith.constant 1 : index
    %c0_13 = arith.constant 0 : index
    %c0_14 = arith.constant 0 : index
    %15 = vector.load %arg4[%c1_12, %c0_13, %c0_14] : memref<2x8x256xf32, #tpu.memory_space<vmem>>, vector<1x8x256xf32>
    %16 = vector.shape_cast %15 : vector<1x8x256xf32> to vector<8x256xf32>
    %17 = vector.shape_cast %14 : vector<8x256xf32> to vector<1x8x256xf32>
    tpu.vector_store %arg4[%c1_12, %c0_13, %c0_14], %17 {strides = array<i32>} : memref<2x8x256xf32, #tpu.memory_space<vmem>>, vector<1x8x256xf32>,
    return
  }
  func.func @transform_0(%arg0: i32) -> (i32, i32, i32) {
    %c0_i32 = arith.constant 0 : i32
    %c0_i32_0 = arith.constant 0 : i32
    %c0_i32_1 = arith.constant 0 : i32
    return %c0_i32, %c0_i32_0, %arg0 : i32, i32, i32
  }
  func.func @transform_1(%arg0: i32) -> (i32, i32) {
    %c0_i32 = arith.constant 0 : i32
    %c0_i32_0 = arith.constant 0 : i32
    %c0_i32_1 = arith.constant 0 : i32
    return %c0_i32, %c0_i32_0 : i32, i32
  }
  func.func @transform_2(%arg0: i32) -> (i32, i32) {
    %c0_i32 = arith.constant 0 : i32
    %c0_i32_0 = arith.constant 0 : i32
    %c0_i32_1 = arith.constant 0 : i32
    return %c0_i32, %c0_i32_0 : i32, i32
  }
  func.func @transform_3(%arg0: i32) -> (i32, i32, i32) {
    %c0_i32 = arith.constant 0 : i32
    %c0_i32_0 = arith.constant 0 : i32
    %c0_i32_1 = arith.constant 0 : i32
    return %c0_i32, %c0_i32_0, %arg0 : i32, i32, i32
  }
}

</mosaic_0001>

<bundles_post_ra>
// kernel: tpu_custom_call.1
= control target key start
LH: loop header
LB: loop body
LE: loop exit
PB: predicated region body
PF: predicated region fallthrough
CT: control target
= control target key end

     0   :  { %vm29_vm0 = vcmask 1043456   ;;  %v242_v4 = vmov 0.0   ;;  %s286_s0 = inlined_call_operand.vmem [shape: f32[2,4,256], index: 0, kind: input, shape index: {}]   ;;  %s287_s1 = inlined_call_operand.vmem [shape: f32[8,4], index: 1, kind: input, shape index: {}]   ;;  %s288_s2 = inlined_call_operand.vmem [shape: f32[8,1], index: 2, kind: input, shape index: {}]   ;;  %s289_s3 = inlined_call_operand.hbm [shape: f32[2,8,256], index: 3, kind: output, shape index: {}]  }
   0x1   :  { %v17_v0 = vld [vmem:[%s286_s0] sm:$0xff]  ;;  %v208_v1 = vld [vmem:[%s286_s0 + $0x8] sm:$0xff]  ;;  %98 = vmatprep.mubr.f32.mxu0 %v242_v4  ;;  %179 = vmatprep.mubr.f32.mxu1 %v242_v4 }
   0x2   :  { %v24_v2 = vcombine.high %v17_v0, %v17_v0  ;;  %v110_v3 = vcombine.high %v208_v1, %v208_v1 }
   0x3   :  { %8 = vsyncpa [#allocation3], 0  ;;  %v15_v5 = vld [vmem:[%s287_s1] sm:$0xff]  ;;  %vm25_vm1 = vcmask 31744   ;;  %v243_v6 = vmov 0   ;;  %s244_s0 = smov [#allocation2]  }
   0x4   :  { %217 = vset.pattern.permute.xlu0 %v243_v6  ;;  %205 = vmatprep.subr.msk.mxu0 %vm29_vm0, %v24_v2  ;;  %v16_v7 = vld [vmem:[%s288_s2] sm:$0xff]  ;;  %s194_s1 = sshll.u32 %s244_s0, 4  ;;  %s195_s1 = int_to_ptr.vmem [resolvable:$true] %s194_s1 }
   0x5   :  { %209 = vmatprep.subr.msk.mxu1 %vm29_vm0, %v110_v3  ;;  %206 = vmatpush1.msk.msra.mxu0 %vm29_vm0, %v17_v0  ;;  %s220_s2 = scalar_lea.vmem %s195_s1, 512  ;;  %p225_p1 = scmp.lt.s32.totalorder %s195_s1, %s195_s1 }
   0x6   :  { %210 = vmatpush1.msk.msra.mxu1 %vm29_vm0, %v208_v1  ;;  %207 = vmatmul.mubr.msk.f32.vlgmr.msra.gmra.mxu0 %vm25_vm1, %v15_v5  ;;  %p221_p0 = scmp.ne.s32.totalorder %s195_s1, %s220_s2  ;;  %p226_p2 = scmp.lt.s32.totalorder %s220_s2, %s220_s2 }
   0x7   :  { %211 = vmatmul.mubr.msk.f32.vlgmr.msra.gmra.mxu1 %vm25_vm1, %v15_v5  ;;  %20 = vperm.xlu0 %217, %v16_v7  }
   0x8   :  { %p227_p3 = por %p226_p2, %p225_p1 }
   0xa   :  { %p228_p4 = pnand %p227_p3, %p221_p0 }
  0x82   :  { %v21_v8 = vpop.permute.xlu0 %20 }
  0xc6   :  { %v100_v9 = vpop.f32.mrf.mxu0 }
  0xc7   :  { %v181_v10 = vpop.f32.mrf.mxu1  ;;  %v101_v11 = vadd.f32 %v100_v9, %v21_v8 }
  0xc8   :  { %v182_v12 = vadd.f32 %v181_v10, %v21_v8  ;;  %v102_v13 = vpop.f32.mrf.mxu0 }
  0xc9   :  { %v183_v14 = vpop.f32.mrf.mxu1  ;;  %105 = vst [vmem:[#allocation2] sm:$0xff] %v101_v11  ;;  %v103_v15 = vadd.f32 %v102_v13, %v21_v8 }
  0xca   :  { %187 = vst [vmem:[#allocation2 + $0x10] sm:$0xff] %v182_v12  ;;  %v184_v16 = vadd.f32 %v183_v14, %v21_v8 }
  0xcb   :  { %106 = vst [vmem:[#allocation2 + $0x8] sm:$0xff] %v103_v15 }
  0xcc   :  { %188 = vst [vmem:[#allocation2 + $0x18] sm:$0xff] %v184_v16 }
  0xcd   :  { %231 = shalt.err (!%p228_p4)
}
  0xce   :  { %s245_s20 = smov 256   ;;  %s246_s21 = smov 16  }
  0xcf   :  { %200 = dma.vmem_to_hbm [thread:$0]  %s195_s1, 512, %s289_s3, [#allocation3], %s245_s20, %s245_s20, %s246_s21  }
  0xd0   :  { %240 = dma.done.wait [#allocation3], 512  }
  0xd1   :  { %241 = vsyncadd [#allocation3], 4294966784 }
  0xd2   :  { %204 = vsyncpa [#allocation3], 1 }

</bundles_post_ra>
